<compile_context>
chip_gen: v6e
topology: v6e:2x2x1
jax: 0.10.0
libtpu: 0.0.40
codegen_flags: <defaults>
</compile_context>

<pallas_src>
import jax
import jax.numpy as jnp
from jax.experimental import pallas as pl
from jax.experimental.pallas import tpu as pltpu


# ----------------------------------------------------------------------------
# Pass 1:  z = relu(A_hat @ xw + b1) @ W2a           (xw = X @ W1, precomputed)
# ----------------------------------------------------------------------------
def _make_pass1_kernel(resident, tk):
    def kernel(a_ref, xw_ref, b1_ref, w2a_ref, z_ref, acc_ref):
        k = pl.program_id(1)

        @pl.when(k == 0)
        def _():
            acc_ref[...] = jnp.zeros_like(acc_ref)

        if resident:
            start = pl.multiple_of(k * tk, tk)
            xw_tile = xw_ref[pl.ds(start, tk), :]
        else:
            xw_tile = xw_ref[...]

        acc_ref[...] += jnp.dot(a_ref[...], xw_tile,
                                preferred_element_type=jnp.float32)

        @pl.when(k == pl.num_programs(1) - 1)
        def _():
            h = jnp.maximum(acc_ref[...] + b1_ref[...], 0.0)
            # TODO(synk): F.dropout(p=0.5, training=True) not implemented;
            #             eval-mode identity only.
            z = jnp.dot(h.astype(w2a_ref.dtype), w2a_ref[...],
                        preferred_element_type=jnp.float32)
            z_ref[...] = z.astype(z_ref.dtype)

    return kernel


# ----------------------------------------------------------------------------
# Pass 2:  out = A_hat @ z + rowsum(A_hat) * (r @ W2[H:] + b2)
#          (bias fused in the finalize; nothing materialized in HBM)
# ----------------------------------------------------------------------------
def _make_pass2_kernel(resident, tk):
    def kernel(a_ref, z_ref, rowsum_ref, rcb_ref, o_ref, acc_ref):
        k = pl.program_id(1)

        @pl.when(k == 0)
        def _():
            acc_ref[...] = jnp.zeros_like(acc_ref)

        if resident:
            start = pl.multiple_of(k * tk, tk)
            z_tile = z_ref[pl.ds(start, tk), :]
        else:
            z_tile = z_ref[...]

        acc_ref[...] += jnp.dot(a_ref[...], z_tile,
                                preferred_element_type=jnp.float32)

        @pl.when(k == pl.num_programs(1) - 1)
        def _():
            o_ref[...] = (acc_ref[...]
                          + rowsum_ref[...] * rcb_ref[...]).astype(o_ref.dtype)

    return kernel


# ----------------------------------------------------------------------------
# Glue
# ----------------------------------------------------------------------------
def _round_up(x, m):
    return ((x + m - 1) // m) * m


def build_norm_adj(edge_index, n_nodes):
    """Dense D^-1/2 (A + I) D^-1/2 with PyG GCNConv conventions (A[dst, src])."""
    src = edge_index[0]
    dst = edge_index[1]
    a = jnp.zeros((n_nodes, n_nodes), jnp.float32).at[dst, src].add(1.0)
    a = a + jnp.eye(n_nodes, dtype=jnp.float32)
    deg = jnp.sum(a, axis=1)
    dinv = jnp.where(deg > 0, 1.0 / jnp.sqrt(deg), 0.0)
    return a * dinv[:, None] * dinv[None, :]


# A panel (xw or z) is kept fully VMEM-resident (read from HBM once) if a
# single copy fits in this budget; otherwise it is streamed in k-panels.
_RESIDENT_PANEL_BYTES = 8 * 1024 * 1024


def gcn_complex_forward(graph, edge_index, rates, params, *, tm=1024, tk=1024):
    n_nodes, n_features = graph.shape
    hidden = params["w1"].shape[1]
    n_classes = params["w2"].shape[1]

    f32, bf16 = jnp.float32, jnp.bfloat16

    h_pad = _round_up(hidden, 128)
    c_pad = _round_up(n_classes, 128)

    # ---- tile clamping + independent row/col padding (no lcm blow-up) ----
    tm = _round_up(tm, 16)
    tk = _round_up(tk, 128)
    tm_eff = min(tm, _round_up(n_nodes, 16))     # rows: sublane granularity
    tk_eff = min(tk, _round_up(n_nodes, 128))    # cols: lane granularity
    n_rows_pad = _round_up(n_nodes, tm_eff)
    n_cols_pad = _round_up(n_nodes, tk_eff)
    # v7x note: with >=2 row blocks the "parallel" row axis feeds both TCs.

    # ---- normalized adjacency, padded, bf16 (the dominant HBM stream) ----
    a_hat = build_norm_adj(edge_index, n_nodes)                       # (N, N) f32
    a_pad = jnp.zeros((n_rows_pad, n_cols_pad), f32).at[:n_nodes, :n_nodes].set(a_hat)
    a_bf = a_pad.astype(bf16)
    rowsum = jnp.sum(a_pad, axis=1, keepdims=True)                    # (rows_pad, 1)

    # ---- resident small tensors (plain-XLA precompute, padded to 128 lanes) ----
    w1p = jnp.zeros((n_features, h_pad), f32).at[:, :hidden].set(params["w1"])
    xw = graph @ w1p                                                  # (N, h_pad)
    xw_bf = jnp.zeros((n_cols_pad, h_pad), f32).at[:n_nodes].set(xw).astype(bf16)

    b1p = jnp.zeros((1, h_pad), f32).at[:, :hidden].set(params["b1"])

    w2a = jnp.zeros((h_pad, c_pad), f32).at[:hidden, :n_classes].set(
        params["w2"][:hidden, :]).astype(bf16)

    # rates encoder (tiny; hoisted out of the kernel) and the W2[H:] term.
    # A_hat @ broadcast(r_c) == rowsum(A_hat) outer r_c  -> folded with b2 and
    # applied in the pass-2 finalize (no (n_pad, c_pad) bias materialized).
    rates_2d = rates.reshape(1, -1)
    e = jnp.maximum(rates_2d @ params["we1"] + params["be1"], 0.0)
    r_emb = e @ params["we2"] + params["be2"]                         # (1, H)
    r_c = r_emb @ params["w2"][hidden:, :]                            # (1, C)
    rcb = jnp.zeros((1, c_pad), f32).at[:, :n_classes].set(r_c + params["b2"])

    # ---- residency decisions + VMEM budget ----
    xw_resident = (n_cols_pad * h_pad * 2) <= _RESIDENT_PANEL_BYTES
    z_resident = (n_cols_pad * c_pad * 2) <= _RESIDENT_PANEL_BYTES

    a_tile_bytes = 2 * tm_eff * tk_eff * 2                            # double-buffered bf16
    p1 = (a_tile_bytes
          + (2 * n_cols_pad * h_pad * 2 if xw_resident else 2 * tk_eff * h_pad * 2)
          + 2 * h_pad * c_pad * 2 + 2 * h_pad * 4
          + 2 * tm_eff * c_pad * 2
          + tm_eff * h_pad * 4)
    p2 = (a_tile_bytes
          + (2 * n_cols_pad * c_pad * 2 if z_resident else 2 * tk_eff * c_pad * 2)
          + 2 * tm_eff * 4 + 2 * c_pad * 4
          + 2 * tm_eff * c_pad * 4
          + tm_eff * c_pad * 4)
    vmem_limit = min(64 * 1024 * 1024, max(32 * 1024 * 1024, int(1.5 * max(p1, p2))))

    grid = (n_rows_pad // tm_eff, n_cols_pad // tk_eff)
    cparams = pltpu.CompilerParams(
        dimension_semantics=("parallel", "arbitrary"),
        vmem_limit_bytes=vmem_limit)

    # ---- pass 1: z = relu(A @ xw + b1) @ W2a ----
    if xw_resident:
        xw_spec = pl.BlockSpec((n_cols_pad, h_pad), lambda i, k: (0, 0))
    else:
        xw_spec = pl.BlockSpec((tk_eff, h_pad), lambda i, k: (k, 0))

    z = pl.pallas_call(
        _make_pass1_kernel(xw_resident, tk_eff),
        out_shape=jax.ShapeDtypeStruct((n_rows_pad, c_pad), bf16),
        grid_spec=pltpu.PrefetchScalarGridSpec(
            num_scalar_prefetch=0,
            grid=grid,
            in_specs=[
                pl.BlockSpec((tm_eff, tk_eff), lambda i, k: (i, k)),   # A_hat tile
                xw_spec,                                               # xw panel
                pl.BlockSpec((1, h_pad), lambda i, k: (0, 0)),         # b1 (resident)
                pl.BlockSpec((h_pad, c_pad), lambda i, k: (0, 0)),     # W2a (resident)
            ],
            out_specs=pl.BlockSpec((tm_eff, c_pad), lambda i, k: (i, 0)),
            scratch_shapes=[pltpu.VMEM((tm_eff, h_pad), jnp.float32)],
        ),
        compiler_params=cparams,
    )(a_bf, xw_bf, b1p, w2a)

    # Pass-2 contraction runs over A's (column-padded) axis; re-pad z to match.
    # (Padding rows multiply only zero A columns, so their values are irrelevant.)
    if n_cols_pad > n_rows_pad:
        z = jnp.concatenate(
            [z, jnp.zeros((n_cols_pad - n_rows_pad, c_pad), z.dtype)], axis=0)
    elif n_cols_pad < n_rows_pad:
        z = z[:n_cols_pad]

    # ---- pass 2: out = A @ z + rowsum * (r_c + b2) ----
    if z_resident:
        z_spec = pl.BlockSpec((n_cols_pad, c_pad), lambda i, k: (0, 0))
    else:
        z_spec = pl.BlockSpec((tk_eff, c_pad), lambda i, k: (k, 0))

    out_pad = pl.pallas_call(
        _make_pass2_kernel(z_resident, tk_eff),
        out_shape=jax.ShapeDtypeStruct((n_rows_pad, c_pad), f32),
        grid_spec=pltpu.PrefetchScalarGridSpec(
            num_scalar_prefetch=0,
            grid=grid,
            in_specs=[
                pl.BlockSpec((tm_eff, tk_eff), lambda i, k: (i, k)),   # A_hat tile
                z_spec,                                                # z panel
                pl.BlockSpec((tm_eff, 1), lambda i, k: (i, 0)),        # rowsum(A) rows
                pl.BlockSpec((1, c_pad), lambda i, k: (0, 0)),         # r_c + b2 row
            ],
            out_specs=pl.BlockSpec((tm_eff, c_pad), lambda i, k: (i, 0)),
            scratch_shapes=[pltpu.VMEM((tm_eff, c_pad), jnp.float32)],
        ),
        compiler_params=cparams,
    )(a_bf, z, rowsum, rcb)

    return out_pad[:n_nodes, :n_classes]


def init_params(key, n_features, n_classes, hidden_channels, n_rates,
                embedding_size=64):
    ks = jax.random.split(key, 8)
    scale = 0.1
    return {
        # GCNConv 1
        "w1": scale * jax.random.normal(ks[0], (n_features, hidden_channels), jnp.float32),
        "b1": scale * jax.random.normal(ks[1], (1, hidden_channels), jnp.float32),
        # EncoderLayer (rates encoder)
        "we1": scale * jax.random.normal(ks[2], (n_rates, embedding_size), jnp.float32),
        "be1": scale * jax.random.normal(ks[3], (1, embedding_size), jnp.float32),
        "we2": scale * jax.random.normal(ks[4], (embedding_size, hidden_channels), jnp.float32),
        "be2": scale * jax.random.normal(ks[5], (1, hidden_channels), jnp.float32),
        # GCNConv 2 (input dim = 2 * hidden_channels)
        "w2": scale * jax.random.normal(ks[6], (2 * hidden_channels, n_classes), jnp.float32),
        "b2": scale * jax.random.normal(ks[7], (1, n_classes), jnp.float32),
    }


if __name__ == "__main__":
    # Small, deterministic problem.
    n_nodes, n_features, n_classes = 16, 4, 4
    hidden_channels, n_rates, embedding_size = 32, 8, 64
    n_edges = 40

    key = jax.random.PRNGKey(0)
    k_x, k_src, k_dst, k_r, k_p = jax.random.split(key, 5)

    graph = jax.random.normal(k_x, (n_nodes, n_features), jnp.float32)
    edge_index = jnp.stack([
        jax.random.randint(k_src, (n_edges,), 0, n_nodes),
        jax.random.randint(k_dst, (n_edges,), 0, n_nodes),
    ]).astype(jnp.int32)
    rates = jax.random.normal(k_r, (n_rates,), jnp.float32)

    params = init_params(k_p, n_features, n_classes, hidden_channels,
                         n_rates, embedding_size)

    out = gcn_complex_forward(graph, edge_index, rates, params)
    out = jax.block_until_ready(out)

    # Pure-JAX f32 reference for a sanity check of the kernel math.
    a_hat = build_norm_adj(edge_index, n_nodes)
    h_ref = jnp.maximum(a_hat @ (graph @ params["w1"]) + params["b1"], 0.0)
    r_ref = jnp.maximum(rates.reshape(1, -1) @ params["we1"] + params["be1"], 0.0) \
            @ params["we2"] + params["be2"]
    cat = jnp.concatenate(
        [h_ref, jnp.broadcast_to(r_ref, (n_nodes, hidden_channels))], axis=1)
    ref = a_hat @ (cat @ params["w2"]) + params["b2"]

    assert out.shape == (n_nodes, n_classes)
    # bf16 streaming of A_hat / xw / z (with f32 accumulation) -> loosened tol.
    assert jnp.allclose(out, ref, atol=3e-2, rtol=3e-2), \
        f"max abs err {jnp.max(jnp.abs(out - ref))}"

    print("KERNEL_OK")
</pallas_src>

<mosaic_0001>
module attributes {stable_mosaic.version = 11 : i64} {
  func.func @kernel(%arg0: i32, %arg1: i32, %arg2: memref<16x128xbf16, #tpu.memory_space<vmem>>, %arg3: memref<128x128xbf16, #tpu.memory_space<vmem>>, %arg4: memref<1x128xf32, #tpu.memory_space<vmem>>, %arg5: memref<128x128xbf16, #tpu.memory_space<vmem>>, %arg6: memref<16x128xbf16, #tpu.memory_space<vmem>>, %arg7: memref<16x128xf32, #tpu.memory_space<vmem>>) attributes {dimension_semantics = [#tpu.dimension_semantics<parallel>, #tpu.dimension_semantics<arbitrary>], iteration_bounds = array<i64: 1, 1>, scalar_prefetch = 0 : i64, scratch_operands = 1 : i64, tpu.core_type = #tpu.core_type<tc>, window_params = [{transform_indices = @transform_0, window_bounds = array<i64: 16, 128>}, {pipeline_mode = #tpu.pipeline_mode<synchronous>, transform_indices = @transform_1, window_bounds = array<i64: 128, 128>}, {pipeline_mode = #tpu.pipeline_mode<synchronous>, transform_indices = @transform_2, window_bounds = array<i64: 1, 128>}, {pipeline_mode = #tpu.pipeline_mode<synchronous>, transform_indices = @transform_3, window_bounds = array<i64: 128, 128>}, {transform_indices = @transform_4, window_bounds = array<i64: 16, 128>}]} {
    %c0_i32 = arith.constant 0 : i32
    %0 = arith.cmpi eq, %arg1, %c0_i32 : i32
    %1 = arith.extui %0 : i1 to i32
    %c0_i32_0 = arith.constant 0 : i32
    %2 = arith.cmpi ne, %1, %c0_i32_0 : i32
    scf.if %2 {
      %cst_9 = arith.constant 0.000000e+00 : f32
      %15 = vector.broadcast %cst_9 : f32 to vector<16x128xf32>
      %c0_10 = arith.constant 0 : index
      %c0_11 = arith.constant 0 : index
      %16 = vector.load %arg7[%c0_10, %c0_11] : memref<16x128xf32, #tpu.memory_space<vmem>>, vector<16x128xf32>
      tpu.vector_store %arg7[%c0_10, %c0_11], %15 {strides = array<i32>} : memref<16x128xf32, #tpu.memory_space<vmem>>, vector<16x128xf32>,
    } else {
    }
    %c128_i32 = arith.constant 128 : i32
    %3 = arith.muli %arg1, %c128_i32 : i32
    %4 = tpu.assume_multiple %3, 128 : i32
    %5 = arith.index_cast %4 : i32 to index
    %c0 = arith.constant 0 : index
    %6 = vector.load %arg3[%5, %c0] : memref<128x128xbf16, #tpu.memory_space<vmem>>, vector<128x128xbf16>
    %c0_1 = arith.constant 0 : index
    %c0_2 = arith.constant 0 : index
    %7 = vector.load %arg7[%c0_1, %c0_2] : memref<16x128xf32, #tpu.memory_space<vmem>>, vector<16x128xf32>
    %c0_3 = arith.constant 0 : index
    %c0_4 = arith.constant 0 : index
    %8 = vector.load %arg2[%c0_3, %c0_4] : memref<16x128xbf16, #tpu.memory_space<vmem>>, vector<16x128xbf16>
    %cst = arith.constant dense<0.000000e+00> : vector<16x128xf32>
    %9 = tpu.matmul %8, %6, %cst {dimension_numbers = #tpu.dot_dimension_numbers<[1], [0], [0], [1], [0, 0, 1, 1], [], []>} : vector<16x128xbf16>, vector<128x128xbf16>, vector<16x128xf32> -> vector<16x128xf32>
    %10 = arith.addf %7, %9 : vector<16x128xf32>
    %c0_5 = arith.constant 0 : index
    %c0_6 = arith.constant 0 : index
    %11 = vector.load %arg7[%c0_5, %c0_6] : memref<16x128xf32, #tpu.memory_space<vmem>>, vector<16x128xf32>
    tpu.vector_store %arg7[%c0_5, %c0_6], %10 {strides = array<i32>} : memref<16x128xf32, #tpu.memory_space<vmem>>, vector<16x128xf32>,
    %c0_i32_7 = arith.constant 0 : i32
    %12 = arith.cmpi eq, %arg1, %c0_i32_7 : i32
    %13 = arith.extui %12 : i1 to i32
    %c0_i32_8 = arith.constant 0 : i32
    %14 = arith.cmpi ne, %13, %c0_i32_8 : i32
    scf.if %14 {
      %c0_9 = arith.constant 0 : index
      %c0_10 = arith.constant 0 : index
      %15 = vector.load %arg7[%c0_9, %c0_10] : memref<16x128xf32, #tpu.memory_space<vmem>>, vector<16x128xf32>
      %c0_11 = arith.constant 0 : index
      %c0_12 = arith.constant 0 : index
      %16 = vector.load %arg4[%c0_11, %c0_12] : memref<1x128xf32, #tpu.memory_space<vmem>>, vector<1x128xf32>
      %17 = vector.broadcast %16 : vector<1x128xf32> to vector<16x128xf32>
      %18 = arith.addf %15, %17 : vector<16x128xf32>
      %cst_13 = arith.constant 0.000000e+00 : f32
      %19 = vector.broadcast %cst_13 : f32 to vector<16x128xf32>
      %20 = arith.maximumf %18, %19 : vector<16x128xf32>
      %21 = arith.truncf %20 : vector<16x128xf32> to vector<16x128xbf16>
      %c0_14 = arith.constant 0 : index
      %c0_15 = arith.constant 0 : index
      %22 = vector.load %arg5[%c0_14, %c0_15] : memref<128x128xbf16, #tpu.memory_space<vmem>>, vector<128x128xbf16>
      %cst_16 = arith.constant dense<0.000000e+00> : vector<16x128xf32>
      %23 = tpu.matmul %21, %22, %cst_16 {dimension_numbers = #tpu.dot_dimension_numbers<[1], [0], [0], [1], [0, 0, 1, 1], [], []>} : vector<16x128xbf16>, vector<128x128xbf16>, vector<16x128xf32> -> vector<16x128xf32>
      %24 = arith.truncf %23 : vector<16x128xf32> to vector<16x128xbf16>
      %c0_17 = arith.constant 0 : index
      %c0_18 = arith.constant 0 : index
      %25 = vector.load %arg6[%c0_17, %c0_18] : memref<16x128xbf16, #tpu.memory_space<vmem>>, vector<16x128xbf16>
      tpu.vector_store %arg6[%c0_17, %c0_18], %24 {strides = array<i32>} : memref<16x128xbf16, #tpu.memory_space<vmem>>, vector<16x128xbf16>,
    } else {
    }
    return
  }
  func.func @transform_0(%arg0: i32, %arg1: i32) -> (i32, i32) {
    %c0_i32 = arith.constant 0 : i32
    return %arg0, %arg1 : i32, i32
  }
  func.func @transform_1(%arg0: i32, %arg1: i32) -> (i32, i32) {
    %c0_i32 = arith.constant 0 : i32
    %c0_i32_0 = arith.constant 0 : i32
    %c0_i32_1 = arith.constant 0 : i32
    return %c0_i32, %c0_i32_0 : i32, i32
  }
  func.func @transform_2(%arg0: i32, %arg1: i32) -> (i32, i32) {
    %c0_i32 = arith.constant 0 : i32
    %c0_i32_0 = arith.constant 0 : i32
    %c0_i32_1 = arith.constant 0 : i32
    return %c0_i32, %c0_i32_0 : i32, i32
  }
  func.func @transform_3(%arg0: i32, %arg1: i32) -> (i32, i32) {
    %c0_i32 = arith.constant 0 : i32
    %c0_i32_0 = arith.constant 0 : i32
    %c0_i32_1 = arith.constant 0 : i32
    return %c0_i32, %c0_i32_0 : i32, i32
  }
  func.func @transform_4(%arg0: i32, %arg1: i32) -> (i32, i32) {
    %c0_i32 = arith.constant 0 : i32
    %c0_i32_0 = arith.constant 0 : i32
    return %arg0, %c0_i32 : i32, i32
  }
}

</mosaic_0001>

<bundles_post_ra>
// kernel: tpu_custom_call.1
= control target key start
LH: loop header
LB: loop body
LE: loop exit
PB: predicated region body
PF: predicated region fallthrough
CT: control target
= control target key end

     0   :  { %9 = vsyncpa [#allocation4], 0  ;;  %s598_s0 = inlined_call_operand.hbm [shape: bf16[16,128], index: 0, kind: input, shape index: {}]   ;;  %s599_s1 = inlined_call_operand.hbm [shape: bf16[128,128], index: 1, kind: input, shape index: {}]   ;;  %s600_s2 = inlined_call_operand.vmem [shape: f32[1,128], index: 2, kind: input, shape index: {}]   ;;  %s601_s3 = inlined_call_operand.hbm [shape: bf16[128,128], index: 3, kind: input, shape index: {}]   ;;  %s602_s4 = inlined_call_operand.hbm [shape: bf16[16,128], index: 4, kind: output, shape index: {}]  }
   0x1   :  { %10 = vsyncpa [#allocation7], 0 }
   0x2   :  { %11 = vsyncpa [#allocation5], 0  ;;  %s538_s15 = smov [#allocation6]   ;;  %s539_s17 = smov [#allocation3]  }
   0x3   :  { %s29_s16 = sshll.u32 %s538_s15, 4  ;;  %s17_s18 = sshll.u32 %s539_s17, 4  ;;  %s30_s16 = int_to_ptr.vmem [resolvable:$true] %s29_s16  ;;  %s18_s18 = int_to_ptr.vmem [resolvable:$true] %s17_s18 }
   0x4   :  { %s460_s19 = scalar_lea.vmem %s30_s16, 1024  ;;  %p465_p1 = scmp.lt.s32.totalorder %s30_s16, %s30_s16 }
   0x5   :  { %p461_p0 = scmp.ne.s32.totalorder %s30_s16, %s460_s19  ;;  %p466_p2 = scmp.lt.s32.totalorder %s460_s19, %s460_s19 }
   0x7   :  { %p467_p3 = por %p466_p2, %p465_p1 }
   0x9   :  { %p468_p4 = pnand %p467_p3, %p461_p0 }
   0xb   :  { %471 = shalt.err (!%p468_p4)
}
   0xc   :  { %s540_s20 = smov 64   ;;  %s541_s21 = smov 4  }
   0xd   :  { %35 = dma.hbm_to_vmem [thread:$0]  %s599_s1, 1024, %s30_s16, [#allocation7], %s540_s20, %s540_s20, %s541_s21  }
   0xe   :  { %s480_s24 = scalar_lea.vmem %s18_s18, 128  ;;  %p485_p6 = scmp.lt.s32.totalorder %s18_s18, %s18_s18 }
   0xf   :  { %p481_p5 = scmp.ne.s32.totalorder %s18_s18, %s480_s24  ;;  %p486_p7 = scmp.lt.s32.totalorder %s480_s24, %s480_s24 }
  0x11   :  { %p487_p8 = por %p486_p7, %p485_p6 }
  0x13   :  { %p488_p9 = pnand %p487_p8, %p481_p5 }
  0x15   :  { %491 = shalt.err (!%p488_p9)
}
  0x16   :  { %23 = dma.hbm_to_vmem [thread:$0]  %s598_s0, 128, %s18_s18, [#allocation4], %s540_s20, %s540_s20, %s541_s21  }
  0x17   :  { %s542_s27 = smov [#allocation8]  }
  0x18   :  { %s43_s28 = sshll.u32 %s542_s27, 4  ;;  %s44_s28 = int_to_ptr.vmem [resolvable:$true] %s43_s28 }
  0x19   :  { %s500_s29 = scalar_lea.vmem %s44_s28, 1024  ;;  %p505_p11 = scmp.lt.s32.totalorder %s44_s28, %s44_s28 }
  0x1a   :  { %p501_p10 = scmp.ne.s32.totalorder %s44_s28, %s500_s29  ;;  %p506_p12 = scmp.lt.s32.totalorder %s500_s29, %s500_s29 }
  0x1c   :  { %p507_p13 = por %p506_p12, %p505_p11 }
  0x1e   :  { %p508_p0 = pnand %p507_p13, %p501_p10 }
  0x20   :  { %511 = shalt.err (!%p508_p0)
}
  0x21   :  { %49 = dma.hbm_to_vmem [thread:$0]  %s601_s3, 1024, %s44_s28, [#allocation7], %s540_s20, %s540_s20, %s541_s21  }
  0x22   :  { %532 = dma.done.wait [#allocation4], 128  }
  0x23   :  { %533 = vsyncadd [#allocation4], 4294967168 }
  0x24   :  { %534 = dma.done.wait [#allocation7], 2048  }
  0x25   :  { %535 = vsyncadd [#allocation7], 4294965248  ;;  %v543_v0 = vmov 0.0   ;;  %vm544_vm0 = vmmov 0   ;;  %v435_v1 = vld [vmem:[#allocation6 + $0x38] sm:$0xff]   ;;  %v436_v2 = vld [vmem:[#allocation6 + $0x30] sm:$0xff]  }
  0x26   :  { %387 = vmatprep.subr.bf16.mxu0 %v543_v0  ;;  %403 = vmatprep.mubr.msk.bf16.mxu0 %vm544_vm0, %v543_v0  ;;  %v437_v3 = vld [vmem:[#allocation6 + $0x28] sm:$0xff]   ;;  %v444_v4 = vld [vmem:[#allocation8 + $0x38] sm:$0xff]   ;;  %v438_v5 = vld [vmem:[#allocation6 + $0x20] sm:$0xff]   ;;  %s545_s5 = smov [#allocation9]  }
  0x27   :  { %407 = vmatprep.subr.bf16.mxu1 %v543_v0  ;;  %423 = vmatprep.mubr.msk.bf16.mxu1 %vm544_vm0, %v543_v0  ;;  %v445_v6 = vld [vmem:[#allocation8 + $0x30] sm:$0xff]   ;;  %v439_v7 = vld [vmem:[#allocation6 + $0x18] sm:$0xff]   ;;  %v446_v8 = vld [vmem:[#allocation8 + $0x28] sm:$0xff]   ;;  %s327_s6 = sshll.u32 %s545_s5, 4  ;;  %s328_s6 = int_to_ptr.vmem [resolvable:$true] %s327_s6 }
  0x28   :  { %388 = vmatpush3.bf16.msra.mxu0 %v435_v1  ;;  %408 = vmatpush3.bf16.msra.mxu1 %v444_v4  ;;  %v440_v9 = vld [vmem:[#allocation6 + $0x10] sm:$0xff]   ;;  %v447_v10 = vld [vmem:[#allocation8 + $0x20] sm:$0xff]   ;;  %v441_v11 = vld [vmem:[#allocation6 + $0x8] sm:$0xff]   ;;  %s512_s7 = scalar_lea.vmem %s328_s6, 128  ;;  %p517_p2 = scmp.lt.s32.totalorder %s328_s6, %s328_s6 }
  0x29   :  { %389 = vmatprep.subr.bf16.mxu0 %v543_v0  ;;  %409 = vmatprep.subr.bf16.mxu1 %v543_v0  ;;  %v448_v12 = vld [vmem:[#allocation8 + $0x18] sm:$0xff]   ;;  %v442_v13 = vld [vmem:[#allocation6] sm:$0xff]   ;;  %v449_v15 = vld [vmem:[#allocation8 + $0x10] sm:$0xff]   ;;  %p513_p1 = scmp.ne.s32.totalorder %s328_s6, %s512_s7  ;;  %p518_p3 = scmp.lt.s32.totalorder %s512_s7, %s512_s7 }
  0x2a   :  { %v443_v14 = vld [vmem:[#allocation3] sm:$0xff]   ;;  %v450_v16 = vld [vmem:[#allocation8 + $0x8] sm:$0xff]   ;;  %v451_v17 = vld [vmem:[#allocation8] sm:$0xff]  }
  0x2b   :  { %v351_v19 = vld [vmem:[%s600_s2] ss:$0 sm:$0xff]  ;;  %p519_p4 = por %p518_p3, %p517_p2 }
  0x2c   :  { %390 = vmatpush3.bf16.msra.mxu0 %v436_v2  ;;  %410 = vmatpush3.bf16.msra.mxu1 %v445_v6 }
  0x2d   :  { %391 = vmatprep.subr.bf16.mxu0 %v543_v0  ;;  %411 = vmatprep.subr.bf16.mxu1 %v543_v0  ;;  %p520_p5 = pnand %p519_p4, %p513_p1 }
  0x30   :  { %392 = vmatpush3.bf16.msra.mxu0 %v437_v3  ;;  %412 = vmatpush3.bf16.msra.mxu1 %v446_v8 }
  0x31   :  { %393 = vmatprep.subr.bf16.mxu0 %v543_v0  ;;  %413 = vmatprep.subr.bf16.mxu1 %v543_v0 }
  0x34   :  { %394 = vmatpush3.bf16.msra.mxu0 %v438_v5  ;;  %414 = vmatpush3.bf16.msra.mxu1 %v447_v10 }
  0x35   :  { %395 = vmatprep.subr.bf16.mxu0 %v543_v0  ;;  %415 = vmatprep.subr.bf16.mxu1 %v543_v0 }
  0x38   :  { %396 = vmatpush3.bf16.msra.mxu0 %v439_v7  ;;  %416 = vmatpush3.bf16.msra.mxu1 %v448_v12 }
  0x39   :  { %397 = vmatprep.subr.bf16.mxu0 %v543_v0  ;;  %417 = vmatprep.subr.bf16.mxu1 %v543_v0 }
  0x3c   :  { %398 = vmatpush3.bf16.msra.mxu0 %v440_v9  ;;  %418 = vmatpush3.bf16.msra.mxu1 %v449_v15 }
  0x3d   :  { %399 = vmatprep.subr.bf16.mxu0 %v543_v0  ;;  %419 = vmatprep.subr.bf16.mxu1 %v543_v0 }
  0x40   :  { %400 = vmatpush3.bf16.msra.mxu0 %v441_v11  ;;  %420 = vmatpush3.bf16.msra.mxu1 %v450_v16 }
  0x41   :  { %401 = vmatprep.subr.bf16.mxu0 %v543_v0  ;;  %421 = vmatprep.subr.bf16.mxu1 %v543_v0 }
  0x44   :  { %402 = vmatpush3.bf16.msra.mxu0 %v442_v13  ;;  %422 = vmatpush3.bf16.msra.mxu1 %v451_v17 }
  0x47   :  { %404 = vmatmul.mubr.bf16.vlgmr.msra.gmra.mxu0 %v443_v14 }
 0x107   :  { %v179_v18 = vpop.f32.mrf.mxu0 }
 0x108   :  { %v202_v21 = vadd.f32 %v351_v19, %v179_v18 }
 0x109   :  { %v405_v20 = vpop.f32.mrf.mxu0 }
 0x10a   :  { %v204_v25 = vmax.f32 %v202_v21, 0.0 }
 0x10b   :  { %v182_v22 = vpop.f32.mrf.mxu0 }
 0x10c   :  { %v203_v23 = vadd.f32 %v351_v19, %v182_v22 }
 0x10d   :  { %v406_v24 = vpop.f32.mrf.mxu0 }
 0x10e   :  { %v205_v26 = vmax.f32 %v203_v23, 0.0 }
 0x110   :  { %v206_v27 = vpack.c.bf16 %v205_v26, %v204_v25 }
 0x112   :  { %424 = vmatmul.mubr.bf16.vlgmr.msra.gmra.mxu1 %v206_v27 }
 0x1d2   :  { %v305_v28 = vpop.f32.mrf.mxu1 }
 0x1d4   :  { %v425_v29 = vpop.f32.mrf.mxu1 }
 0x1d6   :  { %v308_v30 = vpop.f32.mrf.mxu1 }
 0x1d7   :  { %v367_v31 = vpack.c.bf16 %v308_v30, %v305_v28 }
 0x1d8   :  { %v426_v32 = vpop.f32.mrf.mxu1 }
 0x1d9   :  { %368 = vst [vmem:[#allocation9] sm:$0xff] %v367_v31  }
 0x1da   :  { %523 = shalt.err (!%p520_p5)
}
 0x1db   :  { %333 = dma.vmem_to_hbm [thread:$0]  %s328_s6, 128, %s602_s4, [#allocation5], %s540_s20, %s540_s20, %s541_s21  }
 0x1dc   :  { %536 = dma.done.wait [#allocation5], 128  }
 0x1dd   :  { %537 = vsyncadd [#allocation5], 4294967168 }
 0x1de   :  { %337 = vsyncpa [#allocation4], 1 }
 0x1df   :  { %338 = vsyncpa [#allocation7], 1 }
 0x1e0   :  { %339 = vsyncpa [#allocation5], 1 }

</bundles_post_ra>
